<compile_context>
chip_gen: v7x
topology: tpu7x:2x2x1
jax: 0.10.0
libtpu: 0.0.40
codegen_flags: <defaults>
</compile_context>

<pallas_src>
import functools

import numpy as np
import jax
import jax.numpy as jnp
from jax.experimental import pallas as pl
from jax.experimental.pallas import tpu as pltpu


def _sigmoid(z):
    return 1.0 / (1.0 + jnp.exp(-z))


# ----------------------------------------------------------------------------- #
# Fused cSE + sSE kernel: one batch element per grid step
# ----------------------------------------------------------------------------- #
def _csse_kernel(x_ref, w1_ref, b1_ref, w2_ref, b2_ref, wc_ref, bc_ref, o_ref,
                 *, inv_hw: float):
    # x_ref : (C, HW)   one batch element, spatial axis lane-dense
    # w1_ref: (Cr, C)   fc1 weight (PyTorch layout: out x in)
    # b1_ref: (Cr, 1)   fc1 bias
    # w2_ref: (C, Cr)   fc2 weight
    # b2_ref: (C, 1)    fc2 bias
    # wc_ref: (1, C)    1x1 conv weight (C -> 1)
    # bc_ref: (1, 1)    conv bias
    # o_ref : (C, HW)
    x = x_ref[...].astype(jnp.float32)                       # (C, HW)

    # ---- channel SE gate (squeeze over space, excite channels) ------------
    sq = jnp.sum(x, axis=1, keepdims=True) * inv_hw          # (C, 1) spatial mean
    h1 = jnp.dot(w1_ref[...], sq,
                 preferred_element_type=jnp.float32) + b1_ref[...]   # (Cr, 1)
    h1 = jnp.maximum(h1, 0.0)                                # relu
    cse = _sigmoid(jnp.dot(w2_ref[...], h1,
                           preferred_element_type=jnp.float32) + b2_ref[...])  # (C, 1)

    # ---- spatial SE gate (squeeze over channels, excite space) ------------
    sse = _sigmoid(jnp.dot(wc_ref[...], x,
                           preferred_element_type=jnp.float32) + bc_ref[...])  # (1, HW)

    # ---- combine: max(cSE(x), sSE(x)) --------------------------------------
    out = jnp.maximum(x * cse, x * sse)                      # (C, HW)
    o_ref[...] = out.astype(o_ref.dtype)


# ----------------------------------------------------------------------------- #
# Python wrapper reproducing ChannelSpatialSELayer.forward
# ----------------------------------------------------------------------------- #
def channel_spatial_se(x_nchw, fc1_w, fc1_b, fc2_w, fc2_b, conv_w, conv_b):
    B, C, H, W = x_nchw.shape
    Cr = fc1_w.shape[0]
    HW = H * W
    assert fc1_w.shape == (Cr, C) and fc2_w.shape == (C, Cr)
    assert conv_w.shape == (1, C, 1, 1) and conv_b.shape == (1,)

    # Pure reshape (row-major NCHW -> (B, C, H*W)); no transpose / HBM round trip.
    x2 = x_nchw.reshape(B, C, HW)
    w1 = fc1_w.astype(jnp.float32)                   # (Cr, C)
    b1 = fc1_b.reshape(Cr, 1).astype(jnp.float32)    # (Cr, 1)
    w2 = fc2_w.astype(jnp.float32)                   # (C, Cr)
    b2 = fc2_b.reshape(C, 1).astype(jnp.float32)     # (C, 1)
    wc = conv_w.reshape(1, C).astype(jnp.float32)    # (1, C)
    bc = conv_b.reshape(1, 1).astype(jnp.float32)    # (1, 1)

    kernel = functools.partial(_csse_kernel, inv_hw=1.0 / float(HW))

    out = pl.pallas_call(
        kernel,
        out_shape=jax.ShapeDtypeStruct((B, C, HW), x_nchw.dtype),
        grid=(B,),
        in_specs=[
            pl.BlockSpec((None, C, HW), lambda b: (b, 0, 0)),  # x: one batch per step
            pl.BlockSpec((Cr, C), lambda b: (0, 0)),           # weights: grid-invariant
            pl.BlockSpec((Cr, 1), lambda b: (0, 0)),
            pl.BlockSpec((C, Cr), lambda b: (0, 0)),
            pl.BlockSpec((C, 1), lambda b: (0, 0)),
            pl.BlockSpec((1, C), lambda b: (0, 0)),
            pl.BlockSpec((1, 1), lambda b: (0, 0)),
        ],
        out_specs=pl.BlockSpec((None, C, HW), lambda b: (b, 0, 0)),
        compiler_params=pltpu.CompilerParams(
            dimension_semantics=("parallel",)),
    )(x2, w1, b1, w2, b2, wc, bc)

    return out.reshape(B, C, H, W)


# ----------------------------------------------------------------------------- #
# Pure-JAX reference (mirrors the PyTorch forward) for verification
# ----------------------------------------------------------------------------- #
def channel_spatial_se_ref(x, fc1_w, fc1_b, fc2_w, fc2_b, conv_w, conv_b):
    B, C, H, W = x.shape
    # cSE
    sq = x.reshape(B, C, H * W).mean(axis=2)                        # (B, C)
    h1 = jax.nn.relu(sq @ fc1_w.T + fc1_b)                          # (B, Cr)
    cse = jax.nn.sigmoid(h1 @ fc2_w.T + fc2_b)                      # (B, C)
    out_c = x * cse[:, :, None, None]
    # sSE
    wc = conv_w.reshape(C)
    sse = jax.nn.sigmoid(jnp.einsum("bchw,c->bhw", x, wc) + conv_b[0])  # (B, H, W)
    out_s = x * sse[:, None, :, :]
    return jnp.maximum(out_c, out_s)


if __name__ == "__main__":
    B, C, H, W = 2, 4, 16, 16
    reduction_ratio = 2
    Cr = C // reduction_ratio

    key = jax.random.PRNGKey(0)
    ks = jax.random.split(key, 7)
    x = jax.random.normal(ks[0], (B, C, H, W), dtype=jnp.float32)       # NCHW
    fc1_w = jax.random.normal(ks[1], (Cr, C), dtype=jnp.float32) * 0.5
    fc1_b = jax.random.normal(ks[2], (Cr,), dtype=jnp.float32) * 0.1
    fc2_w = jax.random.normal(ks[3], (C, Cr), dtype=jnp.float32) * 0.5
    fc2_b = jax.random.normal(ks[4], (C,), dtype=jnp.float32) * 0.1
    conv_w = jax.random.normal(ks[5], (1, C, 1, 1), dtype=jnp.float32) * 0.5
    conv_b = jax.random.normal(ks[6], (1,), dtype=jnp.float32) * 0.1

    out = channel_spatial_se(x, fc1_w, fc1_b, fc2_w, fc2_b, conv_w, conv_b)
    out = jax.block_until_ready(out)

    ref = jax.block_until_ready(
        channel_spatial_se_ref(x, fc1_w, fc1_b, fc2_w, fc2_b, conv_w, conv_b))

    assert out.shape == (B, C, H, W), out.shape
    np.testing.assert_allclose(np.asarray(out), np.asarray(ref), rtol=1e-5, atol=1e-5)

    print("KERNEL_OK")
</pallas_src>

<mosaic_0001>
module attributes {stable_mosaic.version = 11 : i64} {
  func.func @_csse_kernel(%arg0: i32, %arg1: memref<1x4x256xf32, #tpu.memory_space<vmem>>, %arg2: memref<2x4xf32, #tpu.memory_space<vmem>>, %arg3: memref<2x1xf32, #tpu.memory_space<vmem>>, %arg4: memref<4x2xf32, #tpu.memory_space<vmem>>, %arg5: memref<4x1xf32, #tpu.memory_space<vmem>>, %arg6: memref<1x4xf32, #tpu.memory_space<vmem>>, %arg7: memref<1x1xf32, #tpu.memory_space<vmem>>, %arg8: memref<1x4x256xf32, #tpu.memory_space<vmem>>) attributes {dimension_semantics = [#tpu.dimension_semantics<parallel>], iteration_bounds = array<i64: 2>, scalar_prefetch = 0 : i64, scratch_operands = 0 : i64, tpu.core_type = #tpu.core_type<tc>, window_params = [{transform_indices = @transform_0, window_bounds = array<i64: 1, 4, 256>}, {pipeline_mode = #tpu.pipeline_mode<synchronous>, transform_indices = @transform_1, window_bounds = array<i64: 2, 4>}, {pipeline_mode = #tpu.pipeline_mode<synchronous>, transform_indices = @transform_2, window_bounds = array<i64: 2, 1>}, {pipeline_mode = #tpu.pipeline_mode<synchronous>, transform_indices = @transform_3, window_bounds = array<i64: 4, 2>}, {pipeline_mode = #tpu.pipeline_mode<synchronous>, transform_indices = @transform_4, window_bounds = array<i64: 4, 1>}, {pipeline_mode = #tpu.pipeline_mode<synchronous>, transform_indices = @transform_5, window_bounds = array<i64: 1, 4>}, {pipeline_mode = #tpu.pipeline_mode<synchronous>, transform_indices = @transform_6, window_bounds = array<i64: 1, 1>}, {transform_indices = @transform_7, window_bounds = array<i64: 1, 4, 256>}]} {
    %c0 = arith.constant 0 : index
    %c0_0 = arith.constant 0 : index
    %c0_1 = arith.constant 0 : index
    %0 = vector.load %arg1[%c0, %c0_0, %c0_1] : memref<1x4x256xf32, #tpu.memory_space<vmem>>, vector<1x4x256xf32>
    %1 = vector.shape_cast %0 : vector<1x4x256xf32> to vector<4x256xf32>
    %cst = arith.constant dense<0.000000e+00> : vector<4xf32>
    %2 = vector.multi_reduction <add>, %1, %cst [1] : vector<4x256xf32> to vector<4xf32>
    %3 = vector.shape_cast %2 : vector<4xf32> to vector<4x1xf32>
    %cst_2 = arith.constant 3.906250e-03 : f32
    %4 = vector.broadcast %cst_2 : f32 to vector<4x1xf32>
    %5 = arith.mulf %3, %4 : vector<4x1xf32>
    %c0_3 = arith.constant 0 : index
    %c0_4 = arith.constant 0 : index
    %6 = vector.load %arg2[%c0_3, %c0_4] : memref<2x4xf32, #tpu.memory_space<vmem>>, vector<2x4xf32>
    %cst_5 = arith.constant dense<0.000000e+00> : vector<2x1xf32>
    %7 = tpu.matmul %6, %5, %cst_5 {dimension_numbers = #tpu.dot_dimension_numbers<[1], [0], [0], [1], [0, 0, 1, 1], [], []>} : vector<2x4xf32>, vector<4x1xf32>, vector<2x1xf32> -> vector<2x1xf32>
    %c0_6 = arith.constant 0 : index
    %c0_7 = arith.constant 0 : index
    %8 = vector.load %arg3[%c0_6, %c0_7] : memref<2x1xf32, #tpu.memory_space<vmem>>, vector<2x1xf32>
    %9 = arith.addf %7, %8 : vector<2x1xf32>
    %cst_8 = arith.constant 0.000000e+00 : f32
    %10 = vector.broadcast %cst_8 : f32 to vector<2x1xf32>
    %11 = arith.maximumf %9, %10 : vector<2x1xf32>
    %c0_9 = arith.constant 0 : index
    %c0_10 = arith.constant 0 : index
    %12 = vector.load %arg4[%c0_9, %c0_10] : memref<4x2xf32, #tpu.memory_space<vmem>>, vector<4x2xf32>
    %cst_11 = arith.constant dense<0.000000e+00> : vector<4x1xf32>
    %13 = tpu.matmul %12, %11, %cst_11 {dimension_numbers = #tpu.dot_dimension_numbers<[1], [0], [0], [1], [0, 0, 1, 1], [], []>} : vector<4x2xf32>, vector<2x1xf32>, vector<4x1xf32> -> vector<4x1xf32>
    %c0_12 = arith.constant 0 : index
    %c0_13 = arith.constant 0 : index
    %14 = vector.load %arg5[%c0_12, %c0_13] : memref<4x1xf32, #tpu.memory_space<vmem>>, vector<4x1xf32>
    %15 = arith.addf %13, %14 : vector<4x1xf32>
    %cst_14 = arith.constant 0.000000e+00 : f32
    %16 = vector.broadcast %cst_14 : f32 to vector<4x1xf32>
    %17 = arith.subf %16, %15 : vector<4x1xf32>
    %18 = math.exp %17 : vector<4x1xf32>
    %cst_15 = arith.constant 1.000000e+00 : f32
    %19 = vector.broadcast %cst_15 : f32 to vector<4x1xf32>
    %20 = arith.addf %19, %18 : vector<4x1xf32>
    %cst_16 = arith.constant 1.000000e+00 : f32
    %21 = vector.broadcast %cst_16 : f32 to vector<4x1xf32>
    %22 = arith.divf %21, %20 : vector<4x1xf32>
    %c0_17 = arith.constant 0 : index
    %c0_18 = arith.constant 0 : index
    %23 = vector.load %arg6[%c0_17, %c0_18] : memref<1x4xf32, #tpu.memory_space<vmem>>, vector<1x4xf32>
    %cst_19 = arith.constant dense<0.000000e+00> : vector<1x256xf32>
    %24 = tpu.matmul %23, %1, %cst_19 {dimension_numbers = #tpu.dot_dimension_numbers<[1], [0], [0], [1], [0, 0, 1, 1], [], []>} : vector<1x4xf32>, vector<4x256xf32>, vector<1x256xf32> -> vector<1x256xf32>
    %c0_20 = arith.constant 0 : index
    %c0_21 = arith.constant 0 : index
    %25 = vector.load %arg7[%c0_20, %c0_21] : memref<1x1xf32, #tpu.memory_space<vmem>>, vector<1x1xf32>
    %26 = vector.broadcast %25 : vector<1x1xf32> to vector<1x256xf32>
    %27 = arith.addf %24, %26 : vector<1x256xf32>
    %cst_22 = arith.constant 0.000000e+00 : f32
    %28 = vector.broadcast %cst_22 : f32 to vector<1x256xf32>
    %29 = arith.subf %28, %27 : vector<1x256xf32>
    %30 = math.exp %29 : vector<1x256xf32>
    %cst_23 = arith.constant 1.000000e+00 : f32
    %31 = vector.broadcast %cst_23 : f32 to vector<1x256xf32>
    %32 = arith.addf %31, %30 : vector<1x256xf32>
    %cst_24 = arith.constant 1.000000e+00 : f32
    %33 = vector.broadcast %cst_24 : f32 to vector<1x256xf32>
    %34 = arith.divf %33, %32 : vector<1x256xf32>
    %35 = vector.broadcast %22 : vector<4x1xf32> to vector<4x256xf32>
    %36 = arith.mulf %1, %35 : vector<4x256xf32>
    %37 = vector.broadcast %34 : vector<1x256xf32> to vector<4x256xf32>
    %38 = arith.mulf %1, %37 : vector<4x256xf32>
    %39 = arith.maximumf %36, %38 : vector<4x256xf32>
    %c0_25 = arith.constant 0 : index
    %c0_26 = arith.constant 0 : index
    %c0_27 = arith.constant 0 : index
    %40 = vector.load %arg8[%c0_25, %c0_26, %c0_27] : memref<1x4x256xf32, #tpu.memory_space<vmem>>, vector<1x4x256xf32>
    %41 = vector.shape_cast %40 : vector<1x4x256xf32> to vector<4x256xf32>
    %42 = vector.shape_cast %39 : vector<4x256xf32> to vector<1x4x256xf32>
    tpu.vector_store %arg8[%c0_25, %c0_26, %c0_27], %42 {strides = array<i32>} : memref<1x4x256xf32, #tpu.memory_space<vmem>>, vector<1x4x256xf32>,
    return
  }
  func.func @transform_0(%arg0: i32) -> (i32, i32, i32) {
    %c0_i32 = arith.constant 0 : i32
    %c0_i32_0 = arith.constant 0 : i32
    %c0_i32_1 = arith.constant 0 : i32
    return %arg0, %c0_i32, %c0_i32_0 : i32, i32, i32
  }
  func.func @transform_1(%arg0: i32) -> (i32, i32) {
    %c0_i32 = arith.constant 0 : i32
    %c0_i32_0 = arith.constant 0 : i32
    %c0_i32_1 = arith.constant 0 : i32
    return %c0_i32, %c0_i32_0 : i32, i32
  }
  func.func @transform_2(%arg0: i32) -> (i32, i32) {
    %c0_i32 = arith.constant 0 : i32
    %c0_i32_0 = arith.constant 0 : i32
    %c0_i32_1 = arith.constant 0 : i32
    return %c0_i32, %c0_i32_0 : i32, i32
  }
  func.func @transform_3(%arg0: i32) -> (i32, i32) {
    %c0_i32 = arith.constant 0 : i32
    %c0_i32_0 = arith.constant 0 : i32
    %c0_i32_1 = arith.constant 0 : i32
    return %c0_i32, %c0_i32_0 : i32, i32
  }
  func.func @transform_4(%arg0: i32) -> (i32, i32) {
    %c0_i32 = arith.constant 0 : i32
    %c0_i32_0 = arith.constant 0 : i32
    %c0_i32_1 = arith.constant 0 : i32
    return %c0_i32, %c0_i32_0 : i32, i32
  }
  func.func @transform_5(%arg0: i32) -> (i32, i32) {
    %c0_i32 = arith.constant 0 : i32
    %c0_i32_0 = arith.constant 0 : i32
    %c0_i32_1 = arith.constant 0 : i32
    return %c0_i32, %c0_i32_0 : i32, i32
  }
  func.func @transform_6(%arg0: i32) -> (i32, i32) {
    %c0_i32 = arith.constant 0 : i32
    %c0_i32_0 = arith.constant 0 : i32
    %c0_i32_1 = arith.constant 0 : i32
    return %c0_i32, %c0_i32_0 : i32, i32
  }
  func.func @transform_7(%arg0: i32) -> (i32, i32, i32) {
    %c0_i32 = arith.constant 0 : i32
    %c0_i32_0 = arith.constant 0 : i32
    %c0_i32_1 = arith.constant 0 : i32
    return %arg0, %c0_i32, %c0_i32_0 : i32, i32, i32
  }
}

</mosaic_0001>

<bundles_post_ra>
// kernel: tpu_custom_call.1
= control target key start
LH: loop header
LB: loop body
LE: loop exit
PB: predicated region body
PF: predicated region fallthrough
CT: control target
= control target key end

     0   :  { %s992_s0 = inlined_call_operand.vmem [shape: f32[2,4,256], index: 0, kind: input, shape index: {}]   ;;  %s993_s1 = inlined_call_operand.vmem [shape: f32[2,4], index: 1, kind: input, shape index: {}]   ;;  %s994_s2 = inlined_call_operand.vmem [shape: f32[2,1], index: 2, kind: input, shape index: {}]   ;;  %s995_s3 = inlined_call_operand.vmem [shape: f32[4,2], index: 3, kind: input, shape index: {}]   ;;  %s996_s4 = inlined_call_operand.vmem [shape: f32[4,1], index: 4, kind: input, shape index: {}]   ;;  %s997_s5 = inlined_call_operand.vmem [shape: f32[1,4], index: 5, kind: input, shape index: {}]   ;;  %s998_s6 = inlined_call_operand.<no memory space> [shape: f32[1,1], index: 6, kind: input, shape index: {}]   ;;  %s999_s7 = inlined_call_operand.hbm [shape: f32[2,4,256], index: 7, kind: output, shape index: {}]  }
   0x1   :  { %v12_v0 = vstv %s998_s6 }
   0x2   :  { %13 = vst [vmem:[#allocation2] sm:$0x1] %v12_v0 }
   0x3   :  { %14 = vsyncpa [#allocation4], 0 }
   0x4   :  { %16 = vsyncpa [#allocation4 + $0x1], 0  ;;  %s864_s26 = smov 0   ;;  %s866_s27 = smov 0  }
   0x5   :  { %s868_s28 = smov 0   ;;  %s870_s29 = smov 0  }
   0x6 LB: > { %s885_s6 = sadd.s32 4294967295, %s814_s29   ;;  %s659_s30 = sadd.s32 4294967294, %s814_s29   ;;  %s814_s29 = sphi %s870_s29, %s1005_s29   ;;  %s810_s28 = sphi %s868_s28, %s1004_s28   ;;  %s806_s27 = sphi %s866_s27, %s1003_s27   ;;  %s802_s26 = sphi %s864_s26, %s1002_s26  }
   0x7   : > { %s889_s8 = sadd.s32 1, %s814_s29   ;;  %s181_s9 = sadd.s32 1, %s810_s28 }
   0x8   : > { %s178_s10 = ssub.s32 %s814_s29, %s889_s8  ;;  %p191_p0 = scmp.ne.s32.totalorder %s810_s28, %s806_s27 }
   0x9   : > { %p179_p1 = scmp.eq.s32.totalorder %s178_s10, 0  ;;  %p192_p2 = scmp.eq.s32.totalorder %s885_s6, 1 }
   0xa   : > { %p197_p3 = scmp.ne.s32.totalorder %s806_s27, %s802_s26  ;;  %p198_p4 = scmp.eq.s32.totalorder %s659_s30, 1 }
   0xb   : > { %s900_s11 = scalar_select %p179_p1, %s810_s28, %s181_s9  }
   0xc   : > { %p902_p5 = por %p192_p2, %p191_p0  ;;  %p906_p6 = por %p198_p4, %p197_p3 }
   0xd   : > { %p662_p7 = scmp.ge.s32.totalorder %s814_s29, 1  ;;  %p242_p8 = scmp.lt.s32.totalorder %s814_s29, 3 }
   0xf   : > { %p243_p9 = pnand %p662_p7, %p242_p8 }
  0x10   : > { %p274_p10 = scmp.lt.s32.totalorder (!%p243_p9), %s885_s6, 1  ;;  %vm283_vm0 = vcmask (!%p243_p9), 1043456   ;;  %v816_v6 = vmov (!%p243_p9), 0.0   ;;  %vm817_vm1 = vmmov (!%p243_p9), 0   ;;  %v290_v9 = vld [vmem:[%s993_s1] sm:$0x3] (!%p243_p9)  ;;  %v463_v21 = vlaneseq (!%p243_p9) }
  0x11   : > { %246 = sbr.rel (%p243_p9) target bundleno = 786 (0x312), region = 48  ;;  %684 = vmatprep.subr.mxu0 (!%p243_p9), %v816_v6  ;;  %689 = vmatprep.subr.mxu1 (!%p243_p9), %v816_v6  ;;  %vm292_vm2 = vcmask (!%p243_p9), 31744   ;;  %v456_v10 = vld [vmem:[%s997_s5] sm:$0x1] (!%p243_p9)  ;;  %v818_v12 = vmov (!%p243_p9), 0   ;;  %vm376_vm3 = vcmask (!%p243_p9), 1041408  }
  0x12   : > { %686 = vmatprep.mubr.msk.f32.mxu0 (!%p243_p9), %vm817_vm1, %v816_v6  ;;  %691 = vmatprep.mubr.msk.f32.mxu1 (!%p243_p9), %vm817_vm1, %v816_v6  ;;  %v457_v11 = vld [vmem:[#allocation2] sm:$0x1] (!%p243_p9)  ;;  %vm372_vm4 = vcmask (!%p243_p9), 15360   ;;  %v464_v22 = vshrl.u32 (!%p243_p9), %v463_v21, 7  ;;  %v819_v50 = vmov (!%p243_p9), 839922192  }
  0x13   : > { %737 = vset.pattern.permute.xlu0 (!%p243_p9), %v818_v12  ;;  %738 = vset.pattern.permute.xlu1 (!%p243_p9), %v818_v12  ;;  %v291_v13 = vld [vmem:[%s994_s2] sm:$0x3] (!%p243_p9)  ;;  %v562_v51 = vunpack.c.l.s4 (!%p243_p9), %v819_v50  ;;  %s679_s16 = sshll.u32 (!%p243_p9), %s885_s6, 7 }
  0x14   : > { %v370_v18 = vld [vmem:[%s995_s3] sm:$0xf] (!%p243_p9)  ;;  %v465_v23 = vsub.s32 (!%p243_p9), 0, %v464_v22  ;;  %s950_s21 = scalar_lea.hbm (!%p243_p9), %s999_s7, %s679_s16 }
  0x15   : > { %v371_v32 = vld [vmem:[%s996_s4] sm:$0xf] (!%p243_p9)  ;;  %v563_v52 = vunpack.c.0.s8 (!%p243_p9), %v562_v51 }
  0x17   : > { %v566_v53 = vsub.s32 (!%p243_p9), %v563_v52, %v464_v22 }
  0x18   : > { %s275_s14 = scalar_select %p274_p10, %s885_s6, 1 }
  0x19   : > { %s820_s6 = smov [#allocation3]  }
  0x1a   : > { %s678_s15 = sshll.u32 %s275_s14, 3  ;;  %s271_s14 = sand.u32 1, %s806_s27  }
  0x1b   : > { %s278_s18 = scalar_lea.vmem %s992_s0, %s678_s15  ;;  %s663_s15 = sshll.u32 %s271_s14, 3 }
  0x1c   : > { %v917_v1 = vld [vmem:[%s278_s18] sm:$0xff]  ;;  %s273_s17 = scalar_lea.vmem [#allocation3], %s663_s15  ;;  %s586_s22 = scalar_lea.sflag [#allocation4], %s271_s14 }
  0x1d   : > { %v281_v2 = vcombine.high %v917_v1, %v917_v1  ;;  %v284_v3 = vsel %vm283_vm0, %v917_v1, 0.0  ;;  %s600_s18 = sshll.u32 %s273_s17, 4  ;;  %s756_s24 = sshll.u32 %s820_s6, 4  ;;  %s952_s18 = int_to_ptr.vmem [resolvable:$true] %s600_s18  ;;  %s757_s24 = int_to_ptr.vmem [resolvable:$false] %s756_s24 }
  0x1e   : > { %s752_s23 = scalar_lea.vmem %s952_s18, 128  ;;  %s758_s25 = scalar_lea.vmem %s757_s24, 256 }
  0x1f   : > { %v285_v4 = vsel %vm283_vm0, %v281_v2, 0.0  ;;  %p753_p11 = scmp.ne.s32.totalorder %s952_s18, %s752_s23  ;;  %p759_p0 = scmp.lt.s32.totalorder %s952_s18, %s757_s24 }
  0x20   : > { %v286_v5 = vadd.f32 %v285_v4, %v284_v3  ;;  %p760_p1 = scmp.lt.s32.totalorder %s758_s25, %s752_s23 }
  0x21   : > { %p754_p12 = pnand %p753_p11, %p902_p5 }
  0x22   : > { %287 = vadd.xlane.f32.xlu0 %v286_v5  ;;  %p761_p2 = por %p760_p1, %p759_p0 }
  0x23   : > { %p755_p13 = pneg %p754_p12 }
  0x25   : > { %p762_p3 = pnand %p761_p2, %p755_p13 }
  0x38   : > { %460 = vperm.xlu0 %737, %v457_v11  }
  0xaf   : > { %v288_v7 = vpop.xlane.xlu0 %287 }
  0xb0   : > { %v289_v8 = vmul.f32 0.00390625, %v288_v7 }
  0xb2   : > { %685 = vmatpush3.msk.msra.mxu0 %vm283_vm0, %v289_v8 }
  0xb3   : > { %687 = vmatmul.mubr.msk.f32.vlgmr.msra.gmra.mrb[0].mxu0 %vm292_vm2, %v290_v9  ;;  %670 = vmatprep.subr.msk.mxu0 %vm283_vm0, %v281_v2 }
  0xb4   : > { %671 = vmatpush1.msk.msra.mxu0 %vm283_vm0, %v917_v1  ;;  %538 = vmatprep.mubr.f32.mxu0 %v816_v6 }
  0xb7   : > { %672 = vmatmul.mubr.msk.f32.vlgmr.msra.gmra.mrb[2].mxu0 %vm292_vm2, %v456_v10  ;;  %v461_v24 = vpop.permute.xlu0 %460 }
  0xb8   : > { %v466_v25 = vrot.slane %v461_v24, %v465_v23 }
 0x186   : > { %v365_v14 = vpop.f32.mrb[0].mxu0 }
 0x187   : > { %v366_v15 = vadd.f32 %v365_v14, %v291_v13  ;;  %v688_v16 = vpop.f32.mrb[1].mxu0 }
 0x189   : > { %v369_v17 = vmax.f32 %v366_v15, 0.0 }
 0x18a   : > { %v540_v19 = vpop.f32.mrb[2].mxu0 }
 0x18b   : > { %690 = vmatpush3.msk.msra.mxu1 %vm376_vm3, %v369_v17  ;;  %v542_v20 = vpop.f32.mrb[3].mxu0  ;;  %v541_v26 = vadd.f32 %v540_v19, %v466_v25 }
 0x18c   : > { %692 = vmatmul.mubr.msk.f32.vlgmr.msra.gmra.mrb[0].mxu1 %vm372_vm4, %v370_v18  ;;  %v543_v27 = vadd.f32 %v542_v20, %v466_v25 }
 0x18d   : > { %v545_v28 = vsub.f32 0.0, %v541_v26 }
 0x18e   : > { %v546_v29 = vsub.f32 0.0, %v543_v27 }
 0x18f   : > { %v547_v30 = vmul.f32 1.442695, %v545_v28 }
 0x190   : > { %v549_v31 = vmul.f32 1.442695, %v546_v29 }
 0x191   : > { %740 = vpow2.f32 %v547_v30 }
 0x192   : > { %742 = vpow2.f32 %v549_v31 }
 0x19b   : > { %v741_v38 = vpop.eup %740 }
 0x19c   : > { %v743_v39 = vpop.eup %742  ;;  %v551_v40 = vadd.f32 1.0, %v741_v38 }
 0x19d   : > { %v552_v41 = vadd.f32 1.0, %v743_v39 }
 0x25f   : > { %v446_v33 = vpop.f32.mrb[0].mxu1 }
 0x260   : > { %v447_v34 = vadd.f32 %v446_v33, %v371_v32  ;;  %v693_v35 = vpop.f32.mrb[1].mxu1 }
 0x262   : > { %v450_v36 = vsub.f32 0.0, %v447_v34 }
 0x264   : > { %v451_v37 = vmul.f32 1.442695, %v450_v36 }
 0x266   : > { %744 = vpow2.f32 %v451_v37 }
 0x267   : > { %746 = vrcp.f32 %v551_v40 }
 0x268   : > { %748 = vrcp.f32 %v552_v41 }
 0x270   : > { %v745_v42 = vpop.eup %744 }
 0x271   : > { %v453_v43 = vadd.f32 1.0, %v745_v42  ;;  %v747_v44 = vpop.eup %746 }
 0x272   : > { %v749_v45 = vpop.eup %748  ;;  %v573_v46 = vrot.slane %v747_v44, %v465_v23 }
 0x273   : > { %750 = vrcp.f32 %v453_v43  ;;  %v577_v47 = vrot.slane %v749_v45, %v465_v23 }
 0x275   : > { %v580_v49 = vcombine.low %v573_v46, %v577_v47 }
 0x277   : > { %v582_v56 = vmul.f32 %v580_v49, %v917_v1 }
 0x27d   : > { %v751_v48 = vpop.eup %750 }
 0x27e   : > { %559 = vperm.xlu1 %738, %v751_v48  }
 0x2fd   : > { %v560_v54 = vpop.permute.xlu1 %559 }
 0x2fe   : > { %v567_v55 = vrot.slane %v560_v54, %v566_v53 }
 0x300   : > { %v569_v57 = vmul.f32 %v567_v55, %v917_v1 }
 0x302   : > { %v583_v58 = vmax.f32 %v569_v57, %v582_v56 }
 0x304   : > { %584 = vst [vmem:[%s273_s17] sm:$0xff] %v583_v58 }
 0x305   : > { %765 = shalt.err (!%p762_p3)
}
 0x306   : > { %s766_s30 = scalar_lea.hbm %s950_s21, 128  ;;  %s770_s14 = scalar_lea.hbm %s999_s7, 256 }
 0x307   : > { %p767_p4 = scmp.ne.s32.totalorder %s950_s21, %s766_s30  ;;  %p771_p9 = scmp.lt.u32.totalorder %s950_s21, %s999_s7 }
 0x308   : > { %p772_p10 = scmp.lt.u32.totalorder %s770_s14, %s766_s30  ;;  %p774_p12 = scmp.lt.u32.totalorder %s766_s30, %s950_s21 }
 0x309   : > { %p768_p7 = pnand %p767_p4, %p902_p5 }
 0x30a   : > { %p773_p11 = por %p772_p10, %p771_p9 }
 0x30b   : > { %p769_p8 = pneg %p768_p7 }
 0x30c   : > { %p775_p13 = por %p774_p12, %p773_p11 }
 0x30e   : > { %p776_p0 = pnand %p775_p13, %p769_p8 }
 0x310   : > { %779 = shalt.err (!%p776_p0)
}
 0x311   : > { %694 = dma.vmem_to_hbm [thread:$0]  (%p902_p5), %s952_s18, 128, %s950_s21, %s586_s22  }
 0x312 PF: > { %p700_p1 = scmp.ge.s32.totalorder %s814_s29, 2  ;;  %s612_s17 = sand.u32 1, %s802_s26  }
 0x313   : > { %s613_s19 = scalar_lea.sflag [#allocation4], %s612_s17 }
 0x314   : > { %p697_p2 = pnand %p700_p1, %p906_p6 }
 0x316   : > { %797 = dma.done.wait (!%p697_p2), %s613_s19, 128  }
 0x317   : > { %799 = vsyncadd (!%p697_p2), %s613_s19, 4294967168  ;;  %p19_p3 = scmp.ge.s32.totalorder %s889_s8, 4   ;;  %s1002_s26 = smov %s806_s27 }
 0x318   : > { %s1003_s27 = smov %s810_s28  ;;  %s1004_s28 = smov %s900_s11 }
 0x319   : > { %s1005_s29 = smov %s889_s8  ;;  %21 = sbr.rel (!%p19_p3) target bundleno = 6 (0x6), region = 83 }
 0x320   :  { %618 = vsyncpa [#allocation4], 1 }
 0x321   :  { %620 = vsyncpa [#allocation4 + $0x1], 1 }

</bundles_post_ra>
